<compile_context>
chip_gen: v7x
topology: tpu7x:2x2x1
jax: 0.10.0
libtpu: 0.0.40
codegen_flags: <defaults>
</compile_context>

<pallas_src>
import numpy as np
import jax
import jax.numpy as jnp
from jax.experimental import pallas as pl
from jax.experimental.pallas import tpu as pltpu

CONV = 20                  # conv_size
HID = CONV * 8             # input_layer_size = 160
IN_PAD = 128               # lane-padded board slab width
HID_PAD = 256              # lane-padded hidden width (160 -> 256)
OUT_PAD = 128              # lane-padded head output width (lin3|lin4 in 0..17)
TB = 128                   # batch rows per grid step


# ---------------------------------------------------------------------------
# Pallas kernel: whole forward hot path (3 fused matmuls + ReLUs + masking).
# ---------------------------------------------------------------------------
def dqn_kernel(x_ref, mt_ref, bcat_ref, w5t_ref, b5_ref, w34t_ref, b34_ref,
               o_ref):
    x = x_ref[...]                                              # (TB, 128)

    # first layer == relu(cat(conv1, conv2, lin1(diag), lin1(anti-diag)))
    h = jnp.dot(x, mt_ref[...], preferred_element_type=jnp.float32) + bcat_ref[...]
    h = jnp.maximum(h, 0.0)                                     # (TB, 256)

    # pred = relu(lin5(pred))
    p = jnp.dot(h, w5t_ref[...], preferred_element_type=jnp.float32) + b5_ref[...]
    p = jnp.maximum(p, 0.0)                                     # (TB, 256)

    # fused heads: lanes 0..8 = relu(lin3), lanes 9..17 = relu(lin4), rest 0
    f = jnp.dot(p, w34t_ref[...], preferred_element_type=jnp.float32) + b34_ref[...]
    f = jnp.maximum(f, 0.0)                                     # (TB, 128)

    # mask1 = where(cell == 0, 0, 1); board is replicated in lanes 0..8 & 9..17
    # so one (TB, 128) mask covers both heads; lanes 18..127 stay exactly 0.
    mask1 = (x != 0.0).astype(jnp.float32)
    o_ref[...] = (1.0 - mask1) * f - mask1


# ---------------------------------------------------------------------------
# One-time parameter preparation (exact folding + lane padding, host-side).
# ---------------------------------------------------------------------------
def prepare_params(params):
    (W1, b1, W2, b2, Wl1, bl1, W5, b5, W3, b3, W4, b4) = [
        np.asarray(p, np.float32) for p in params
    ]

    # Fold conv1(3x1), conv2(1x3), lin1(diag), lin1(anti-diag) into M @ x9 + b.
    # x9[i*3 + j] == x[i, j]; ordering matches torch.cat((out1,out2,out3,out4)).
    M = np.zeros((HID, 9), np.float32)
    bcat = np.zeros((HID,), np.float32)
    for c in range(CONV):
        for i in range(3):
            for j in range(3):
                M[c * 3 + j, i * 3 + j] += W1[c, i]          # conv1 (3,1)
                M[60 + c * 3 + i, i * 3 + j] += W2[c, j]     # conv2 (1,3)
        for k in range(3):
            M[120 + c, 4 * k] += Wl1[c, k]                   # lin1(diag)
            M[140 + c, (2 - k) * 3 + k] += Wl1[c, k]         # lin1(anti-diag)
        bcat[c * 3:(c + 1) * 3] = b1[c]
        bcat[60 + c * 3:60 + (c + 1) * 3] = b2[c]
        bcat[120 + c] = bl1[c]
        bcat[140 + c] = bl1[c]

    # Lane/sublane padding (zeros -> mathematically exact through ReLUs).
    mt_pad = np.zeros((IN_PAD, HID_PAD), np.float32)
    mt_pad[:9, :HID] = M.T
    bcat_pad = np.zeros((1, HID_PAD), np.float32)
    bcat_pad[0, :HID] = bcat

    w5t_pad = np.zeros((HID_PAD, HID_PAD), np.float32)
    w5t_pad[:HID, :HID] = W5.T
    b5_pad = np.zeros((1, HID_PAD), np.float32)
    b5_pad[0, :HID] = b5

    w34t_pad = np.zeros((HID_PAD, OUT_PAD), np.float32)      # fused lin3|lin4
    w34t_pad[:HID, 0:9] = W3.T
    w34t_pad[:HID, 9:18] = W4.T
    b34_pad = np.zeros((1, OUT_PAD), np.float32)
    b34_pad[0, 0:9] = b3
    b34_pad[0, 9:18] = b4

    return tuple(jnp.asarray(a) for a in
                 (mt_pad, bcat_pad, w5t_pad, b5_pad, w34t_pad, b34_pad))


def make_dqn_forward(params, batch_tile=TB):
    """Returns a jitted forward fn: x (3,3) or (B,3,3) -> (o1, o2)."""
    mt, bcat, w5t, b5, w34t, b34 = prepare_params(params)

    const = lambda i: (0, 0)   # weights: same block every grid step (resident)

    @jax.jit
    def fwd(x):
        squeeze = (x.ndim == 2)
        if squeeze:
            x = x[None]
        B = x.shape[0]
        x9 = x.reshape(B, 9).astype(jnp.float32)

        # Pad batch to a multiple of the tile; lay the board out lane-dense,
        # duplicated in lanes 9..17 (provides the lin4 head's mask in-place).
        Bp = ((B + batch_tile - 1) // batch_tile) * batch_tile
        xpad = jnp.zeros((Bp, IN_PAD), jnp.float32)
        xpad = xpad.at[:B, 0:9].set(x9).at[:B, 9:18].set(x9)

        out = pl.pallas_call(
            dqn_kernel,
            out_shape=jax.ShapeDtypeStruct((Bp, OUT_PAD), jnp.float32),
            grid_spec=pltpu.PrefetchScalarGridSpec(
                num_scalar_prefetch=0,
                grid=(Bp // batch_tile,),
                in_specs=[
                    pl.BlockSpec((batch_tile, IN_PAD), lambda i: (i, 0)),
                    pl.BlockSpec((IN_PAD, HID_PAD), const),
                    pl.BlockSpec((1, HID_PAD), const),
                    pl.BlockSpec((HID_PAD, HID_PAD), const),
                    pl.BlockSpec((1, HID_PAD), const),
                    pl.BlockSpec((HID_PAD, OUT_PAD), const),
                    pl.BlockSpec((1, OUT_PAD), const),
                ],
                out_specs=pl.BlockSpec((batch_tile, OUT_PAD), lambda i: (i, 0)),
            ),
            compiler_params=pltpu.CompilerParams(
                dimension_semantics=("parallel",)),
        )(xpad, mt, bcat, w5t, b5, w34t, b34)

        o1 = out[:B, 0:9]
        o2 = out[:B, 9:18]
        if squeeze:
            o1, o2 = o1[0], o2[0]
        return o1, o2

    return fwd


# ---------------------------------------------------------------------------
# Pure-JAX literal reference (mirrors the PyTorch forward op-by-op, 1 board).
# ---------------------------------------------------------------------------
def dqn_reference(x, params):
    (W1, b1, W2, b2, Wl1, bl1, W5, b5, W3, b3, W4, b4) = params
    out1 = (jnp.einsum('ci,ij->cj', W1, x) + b1[:, None]).reshape(60)   # conv1
    out2 = (jnp.einsum('cj,ij->ci', W2, x) + b2[:, None]).reshape(60)   # conv2
    d1 = jnp.diagonal(x)
    d2 = jnp.diagonal(x[::-1, :])            # x.rot90(1, (1,0)).diagonal()
    out3 = Wl1 @ d1 + bl1
    out4 = Wl1 @ d2 + bl1
    xf = x.reshape(9)
    mask1 = (xf != 0).astype(jnp.float32)
    mask2 = 1.0 - mask1
    pred = jax.nn.relu(jnp.concatenate([out1, out2, out3, out4]))
    pred = jax.nn.relu(W5 @ pred + b5)
    f1 = jax.nn.relu(W3 @ pred + b3)
    f2 = jax.nn.relu(W4 @ pred + b4)
    return mask2 * f1 - mask1, mask2 * f2 - mask1


def init_params(key):
    def uinit(k, shape, fan_in):
        bound = 1.0 / np.sqrt(fan_in)
        return jax.random.uniform(k, shape, jnp.float32, -bound, bound)

    ks = jax.random.split(key, 12)
    W1, b1 = uinit(ks[0], (CONV, 3), 3), uinit(ks[1], (CONV,), 3)       # conv1
    W2, b2 = uinit(ks[2], (CONV, 3), 3), uinit(ks[3], (CONV,), 3)       # conv2
    Wl1, bl1 = uinit(ks[4], (CONV, 3), 3), uinit(ks[5], (CONV,), 3)     # lin1
    W5, b5 = uinit(ks[6], (HID, HID), HID), uinit(ks[7], (HID,), HID)   # lin5
    W3, b3 = uinit(ks[8], (9, HID), HID), uinit(ks[9], (9,), HID)       # lin3
    W4, b4 = uinit(ks[10], (9, HID), HID), uinit(ks[11], (9,), HID)     # lin4
    return (W1, b1, W2, b2, Wl1, bl1, W5, b5, W3, b3, W4, b4)


if __name__ == "__main__":
    key = jax.random.PRNGKey(0)
    kp, kx = jax.random.split(key)
    params = init_params(kp)
    fwd = make_dqn_forward(params)   # one-time fold / pad / device placement

    # Batch of 3x3 boards with values in {-1, 0, 1}.
    B = 256
    x = jax.random.randint(kx, (B, 3, 3), -1, 2).astype(jnp.float32)

    o1, o2 = fwd(x)
    jax.block_until_ready((o1, o2))

    r1, r2 = jax.vmap(lambda xb: dqn_reference(xb, params))(x)
    assert o1.shape == (B, 9) and o2.shape == (B, 9)
    assert jnp.allclose(o1, r1, atol=1e-4, rtol=1e-4)
    assert jnp.allclose(o2, r2, atol=1e-4, rtol=1e-4)

    # Single-board path (matches the original PyTorch forward signature).
    s1, s2 = fwd(x[0])
    jax.block_until_ready((s1, s2))
    assert s1.shape == (9,) and s2.shape == (9,)
    assert jnp.allclose(s1, r1[0], atol=1e-4, rtol=1e-4)
    assert jnp.allclose(s2, r2[0], atol=1e-4, rtol=1e-4)

    print("KERNEL_OK")
</pallas_src>

<mosaic_0001>
module attributes {stable_mosaic.version = 11 : i64} {
  func.func @dqn_kernel(%arg0: i32, %arg1: memref<128x128xf32, #tpu.memory_space<vmem>>, %arg2: memref<128x256xf32, #tpu.memory_space<vmem>>, %arg3: memref<1x256xf32, #tpu.memory_space<vmem>>, %arg4: memref<256x256xf32, #tpu.memory_space<vmem>>, %arg5: memref<1x256xf32, #tpu.memory_space<vmem>>, %arg6: memref<256x128xf32, #tpu.memory_space<vmem>>, %arg7: memref<1x128xf32, #tpu.memory_space<vmem>>, %arg8: memref<128x128xf32, #tpu.memory_space<vmem>>) attributes {dimension_semantics = [#tpu.dimension_semantics<parallel>], iteration_bounds = array<i64: 2>, scalar_prefetch = 0 : i64, scratch_operands = 0 : i64, tpu.core_type = #tpu.core_type<tc>, window_params = [{transform_indices = @transform_0, window_bounds = array<i64: 128, 128>}, {pipeline_mode = #tpu.pipeline_mode<synchronous>, transform_indices = @transform_1, window_bounds = array<i64: 128, 256>}, {pipeline_mode = #tpu.pipeline_mode<synchronous>, transform_indices = @transform_2, window_bounds = array<i64: 1, 256>}, {pipeline_mode = #tpu.pipeline_mode<synchronous>, transform_indices = @transform_3, window_bounds = array<i64: 256, 256>}, {pipeline_mode = #tpu.pipeline_mode<synchronous>, transform_indices = @transform_4, window_bounds = array<i64: 1, 256>}, {pipeline_mode = #tpu.pipeline_mode<synchronous>, transform_indices = @transform_5, window_bounds = array<i64: 256, 128>}, {pipeline_mode = #tpu.pipeline_mode<synchronous>, transform_indices = @transform_6, window_bounds = array<i64: 1, 128>}, {transform_indices = @transform_7, window_bounds = array<i64: 128, 128>}]} {
    %c0 = arith.constant 0 : index
    %c0_0 = arith.constant 0 : index
    %0 = vector.load %arg1[%c0, %c0_0] : memref<128x128xf32, #tpu.memory_space<vmem>>, vector<128x128xf32>
    %c0_1 = arith.constant 0 : index
    %c0_2 = arith.constant 0 : index
    %1 = vector.load %arg2[%c0_1, %c0_2] : memref<128x256xf32, #tpu.memory_space<vmem>>, vector<128x256xf32>
    %cst = arith.constant dense<0.000000e+00> : vector<128x256xf32>
    %2 = tpu.matmul %0, %1, %cst {dimension_numbers = #tpu.dot_dimension_numbers<[1], [0], [0], [1], [0, 0, 1, 1], [], []>} : vector<128x128xf32>, vector<128x256xf32>, vector<128x256xf32> -> vector<128x256xf32>
    %c0_3 = arith.constant 0 : index
    %c0_4 = arith.constant 0 : index
    %3 = vector.load %arg3[%c0_3, %c0_4] : memref<1x256xf32, #tpu.memory_space<vmem>>, vector<1x256xf32>
    %4 = vector.broadcast %3 : vector<1x256xf32> to vector<128x256xf32>
    %5 = arith.addf %2, %4 : vector<128x256xf32>
    %cst_5 = arith.constant 0.000000e+00 : f32
    %6 = vector.broadcast %cst_5 : f32 to vector<128x256xf32>
    %7 = arith.maximumf %5, %6 : vector<128x256xf32>
    %c0_6 = arith.constant 0 : index
    %c0_7 = arith.constant 0 : index
    %8 = vector.load %arg4[%c0_6, %c0_7] : memref<256x256xf32, #tpu.memory_space<vmem>>, vector<256x256xf32>
    %cst_8 = arith.constant dense<0.000000e+00> : vector<128x256xf32>
    %9 = tpu.matmul %7, %8, %cst_8 {dimension_numbers = #tpu.dot_dimension_numbers<[1], [0], [0], [1], [0, 0, 1, 1], [], []>} : vector<128x256xf32>, vector<256x256xf32>, vector<128x256xf32> -> vector<128x256xf32>
    %c0_9 = arith.constant 0 : index
    %c0_10 = arith.constant 0 : index
    %10 = vector.load %arg5[%c0_9, %c0_10] : memref<1x256xf32, #tpu.memory_space<vmem>>, vector<1x256xf32>
    %11 = vector.broadcast %10 : vector<1x256xf32> to vector<128x256xf32>
    %12 = arith.addf %9, %11 : vector<128x256xf32>
    %cst_11 = arith.constant 0.000000e+00 : f32
    %13 = vector.broadcast %cst_11 : f32 to vector<128x256xf32>
    %14 = arith.maximumf %12, %13 : vector<128x256xf32>
    %c0_12 = arith.constant 0 : index
    %c0_13 = arith.constant 0 : index
    %15 = vector.load %arg6[%c0_12, %c0_13] : memref<256x128xf32, #tpu.memory_space<vmem>>, vector<256x128xf32>
    %cst_14 = arith.constant dense<0.000000e+00> : vector<128x128xf32>
    %16 = tpu.matmul %14, %15, %cst_14 {dimension_numbers = #tpu.dot_dimension_numbers<[1], [0], [0], [1], [0, 0, 1, 1], [], []>} : vector<128x256xf32>, vector<256x128xf32>, vector<128x128xf32> -> vector<128x128xf32>
    %c0_15 = arith.constant 0 : index
    %c0_16 = arith.constant 0 : index
    %17 = vector.load %arg7[%c0_15, %c0_16] : memref<1x128xf32, #tpu.memory_space<vmem>>, vector<1x128xf32>
    %18 = vector.broadcast %17 : vector<1x128xf32> to vector<128x128xf32>
    %19 = arith.addf %16, %18 : vector<128x128xf32>
    %cst_17 = arith.constant 0.000000e+00 : f32
    %20 = vector.broadcast %cst_17 : f32 to vector<128x128xf32>
    %21 = arith.maximumf %19, %20 : vector<128x128xf32>
    %cst_18 = arith.constant 0.000000e+00 : f32
    %22 = vector.broadcast %cst_18 : f32 to vector<128x128xf32>
    %23 = arith.cmpf one, %0, %22 : vector<128x128xf32>
    %24 = arith.extui %23 : vector<128x128xi1> to vector<128x128xi32>
    %25 = arith.sitofp %24 : vector<128x128xi32> to vector<128x128xf32>
    %cst_19 = arith.constant 1.000000e+00 : f32
    %26 = vector.broadcast %cst_19 : f32 to vector<128x128xf32>
    %27 = arith.subf %26, %25 : vector<128x128xf32>
    %28 = arith.mulf %27, %21 : vector<128x128xf32>
    %29 = arith.subf %28, %25 : vector<128x128xf32>
    %c0_20 = arith.constant 0 : index
    %c0_21 = arith.constant 0 : index
    %30 = vector.load %arg8[%c0_20, %c0_21] : memref<128x128xf32, #tpu.memory_space<vmem>>, vector<128x128xf32>
    tpu.vector_store %arg8[%c0_20, %c0_21], %29 {strides = array<i32>} : memref<128x128xf32, #tpu.memory_space<vmem>>, vector<128x128xf32>,
    return
  }
  func.func @transform_0(%arg0: i32) -> (i32, i32) {
    %c0_i32 = arith.constant 0 : i32
    %c0_i32_0 = arith.constant 0 : i32
    return %arg0, %c0_i32 : i32, i32
  }
  func.func @transform_1(%arg0: i32) -> (i32, i32) {
    %c0_i32 = arith.constant 0 : i32
    %c0_i32_0 = arith.constant 0 : i32
    %c0_i32_1 = arith.constant 0 : i32
    return %c0_i32, %c0_i32_0 : i32, i32
  }
  func.func @transform_2(%arg0: i32) -> (i32, i32) {
    %c0_i32 = arith.constant 0 : i32
    %c0_i32_0 = arith.constant 0 : i32
    %c0_i32_1 = arith.constant 0 : i32
    return %c0_i32, %c0_i32_0 : i32, i32
  }
  func.func @transform_3(%arg0: i32) -> (i32, i32) {
    %c0_i32 = arith.constant 0 : i32
    %c0_i32_0 = arith.constant 0 : i32
    %c0_i32_1 = arith.constant 0 : i32
    return %c0_i32, %c0_i32_0 : i32, i32
  }
  func.func @transform_4(%arg0: i32) -> (i32, i32) {
    %c0_i32 = arith.constant 0 : i32
    %c0_i32_0 = arith.constant 0 : i32
    %c0_i32_1 = arith.constant 0 : i32
    return %c0_i32, %c0_i32_0 : i32, i32
  }
  func.func @transform_5(%arg0: i32) -> (i32, i32) {
    %c0_i32 = arith.constant 0 : i32
    %c0_i32_0 = arith.constant 0 : i32
    %c0_i32_1 = arith.constant 0 : i32
    return %c0_i32, %c0_i32_0 : i32, i32
  }
  func.func @transform_6(%arg0: i32) -> (i32, i32) {
    %c0_i32 = arith.constant 0 : i32
    %c0_i32_0 = arith.constant 0 : i32
    %c0_i32_1 = arith.constant 0 : i32
    return %c0_i32, %c0_i32_0 : i32, i32
  }
  func.func @transform_7(%arg0: i32) -> (i32, i32) {
    %c0_i32 = arith.constant 0 : i32
    %c0_i32_0 = arith.constant 0 : i32
    return %arg0, %c0_i32 : i32, i32
  }
}

</mosaic_0001>

<bundles_post_ra>
// kernel: fwd.1
= control target key start
LH: loop header
LB: loop body
LE: loop exit
PB: predicated region body
PF: predicated region fallthrough
CT: control target
= control target key end

     0   :  { %s1483_s24 = smov 0   ;;  %s2182_s0 = inlined_call_operand.vmem [shape: f32[256,128], index: 0, kind: input, shape index: {}]   ;;  %s2183_s1 = inlined_call_operand.vmem [shape: f32[128,256], index: 1, kind: input, shape index: {}]   ;;  %s2184_s2 = inlined_call_operand.vmem [shape: f32[1,256], index: 2, kind: input, shape index: {}]   ;;  %s2185_s3 = inlined_call_operand.vmem [shape: f32[256,256], index: 3, kind: input, shape index: {}]   ;;  %s2186_s4 = inlined_call_operand.vmem [shape: f32[1,256], index: 4, kind: input, shape index: {}]   ;;  %s2187_s5 = inlined_call_operand.vmem [shape: f32[256,128], index: 5, kind: input, shape index: {}]   ;;  %s2188_s6 = inlined_call_operand.vmem [shape: f32[1,128], index: 6, kind: input, shape index: {}]   ;;  %s2189_s7 = inlined_call_operand.vmem [shape: f32[256,128], index: 7, kind: output, shape index: {}]  }
   0x1 LB: > { %s1172_s25 = sadd.s32 4294967295, %s1440_s24   ;;  %p1176_p0 = scmp.ge.s32.totalorder %s1440_s24, 1  ;;  %s1440_s24 = sphi %s1483_s24, %s17_s24  }
   0x2   : > { %p238_p1 = scmp.lt.s32.totalorder %s1440_s24, 3 }
   0x4   : > { %p239_p2 = pnand %p1176_p0, %p238_p1 }
   0x5   : > { %v299_v0 = vld [vmem:[%s2183_s1 + $0x8] sm:$0xff] (!%p239_p2)  ;;  %v301_v1 = vld [vmem:[%s2183_s1 + $0x18] sm:$0xff] (!%p239_p2)  ;;  %v298_v2 = vld [vmem:[%s2183_s1] sm:$0xff] (!%p239_p2)  ;;  %v1442_v7 = vmov (!%p239_p2), 0.0   ;;  %s1177_s28 = sshll.u32 (!%p239_p2), %s1172_s25, 4 }
   0x6   : > { %242 = sbr.rel (%p239_p2) target bundleno = 760 (0x2f8), region = 48  ;;  %v1280_v3 = vpack.c.bf16 (!%p239_p2), %v301_v1, %v299_v0  ;;  %v300_v4 = vld [vmem:[%s2183_s1 + $0x10] sm:$0xff] (!%p239_p2)  ;;  %v303_v5 = vld [vmem:[%s2183_s1 + $0x28] sm:$0xff] (!%p239_p2)  ;;  %v305_v6 = vld [vmem:[%s2183_s1 + $0x38] sm:$0xff] (!%p239_p2)  ;;  %406 = vmatprep.mubr.f32.mxu0 (!%p239_p2), %v1442_v7  ;;  %p271_p3 = scmp.lt.s32.totalorder (!%p239_p2), %s1177_s28, 31 }
   0x7   : > { %v1282_v8 = vpack.c.bf16 (!%p239_p2), %v300_v4, %v298_v2  ;;  %v1284_v9 = vpack.c.bf16 (!%p239_p2), %v305_v6, %v303_v5  ;;  %v302_v10 = vld [vmem:[%s2183_s1 + $0x20] sm:$0xff] (!%p239_p2)  ;;  %v304_v11 = vld [vmem:[%s2183_s1 + $0x30] sm:$0xff] (!%p239_p2)  ;;  %v307_v12 = vld [vmem:[%s2183_s1 + $0x48] sm:$0xff] (!%p239_p2) }
   0x8   : > { %1281 = vmatprep.subr.bf16.mxu0 (!%p239_p2), %v1280_v3  ;;  %v309_v13 = vld [vmem:[%s2183_s1 + $0x58] sm:$0xff] (!%p239_p2)  ;;  %v1286_v14 = vpack.c.bf16 (!%p239_p2), %v304_v11, %v302_v10  ;;  %v306_v16 = vld [vmem:[%s2183_s1 + $0x40] sm:$0xff] (!%p239_p2)  ;;  %v308_v17 = vld [vmem:[%s2183_s1 + $0x50] sm:$0xff] (!%p239_p2) }
   0x9   : > { %1283 = vmatpush1.bf16.msra.mxu0 (!%p239_p2), %v1282_v8  ;;  %v1288_v15 = vpack.c.bf16 (!%p239_p2), %v309_v13, %v307_v12  ;;  %v311_v18 = vld [vmem:[%s2183_s1 + $0x68] sm:$0xff] (!%p239_p2)  ;;  %v313_v19 = vld [vmem:[%s2183_s1 + $0x78] sm:$0xff] (!%p239_p2)  ;;  %v1290_v20 = vpack.c.bf16 (!%p239_p2), %v308_v17, %v306_v16  ;;  %v310_v22 = vld [vmem:[%s2183_s1 + $0x60] sm:$0xff] (!%p239_p2) }
   0xa   : > { %1285 = vmatprep.subr.bf16.mxu0 (!%p239_p2), %v1284_v9  ;;  %v1292_v21 = vpack.c.bf16 (!%p239_p2), %v313_v19, %v311_v18  ;;  %v312_v23 = vld [vmem:[%s2183_s1 + $0x70] sm:$0xff] (!%p239_p2)  ;;  %v315_v24 = vld [vmem:[%s2183_s1 + $0x88] sm:$0xff] (!%p239_p2)  ;;  %v317_v25 = vld [vmem:[%s2183_s1 + $0x98] sm:$0xff] (!%p239_p2) }
   0xb   : > { %v1294_v26 = vpack.c.bf16 (!%p239_p2), %v312_v23, %v310_v22  ;;  %v1296_v27 = vpack.c.bf16 (!%p239_p2), %v317_v25, %v315_v24  ;;  %v314_v28 = vld [vmem:[%s2183_s1 + $0x80] sm:$0xff] (!%p239_p2)  ;;  %v316_v29 = vld [vmem:[%s2183_s1 + $0x90] sm:$0xff] (!%p239_p2)  ;;  %v319_v30 = vld [vmem:[%s2183_s1 + $0xa8] sm:$0xff] (!%p239_p2) }
   0xc   : > { %v321_v31 = vld [vmem:[%s2183_s1 + $0xb8] sm:$0xff] (!%p239_p2)  ;;  %v1298_v32 = vpack.c.bf16 (!%p239_p2), %v316_v29, %v314_v28  ;;  %v318_v34 = vld [vmem:[%s2183_s1 + $0xa0] sm:$0xff] (!%p239_p2)  ;;  %v320_v35 = vld [vmem:[%s2183_s1 + $0xb0] sm:$0xff] (!%p239_p2) }
   0xd   : > { %1287 = vmatpush1.bf16.msra.mxu0 %v1286_v14  ;;  %v1300_v33 = vpack.c.bf16 %v321_v31, %v319_v30  ;;  %v323_v36 = vld [vmem:[%s2183_s1 + $0xc8] sm:$0xff]  ;;  %v325_v37 = vld [vmem:[%s2183_s1 + $0xd8] sm:$0xff]  ;;  %v322_v38 = vld [vmem:[%s2183_s1 + $0xc0] sm:$0xff]  ;;  %v1302_v40 = vpack.c.bf16 %v320_v35, %v318_v34  ;;  %s2191_s28 = smov (!%p271_p3, %s1177_s28), 31 }
   0xe   : > { %1289 = vmatprep.subr.bf16.mxu0 %v1288_v15  ;;  %v324_v39 = vld [vmem:[%s2183_s1 + $0xd0] sm:$0xff]  ;;  %v536_v41 = vld [vmem:[%s2185_s3 + $0x8] sm:$0xff]  ;;  %v538_v42 = vld [vmem:[%s2185_s3 + $0x18] sm:$0xff]  ;;  %v1304_v44 = vpack.c.bf16 %v325_v37, %v323_v36  ;;  %s1178_s26 = sshll.u32 %s2191_s28, 3 }
   0xf   : > { %v535_v43 = vld [vmem:[%s2185_s3] sm:$0xff]  ;;  %v537_v45 = vld [vmem:[%s2185_s3 + $0x10] sm:$0xff]  ;;  %v540_v46 = vld [vmem:[%s2185_s3 + $0x28] sm:$0xff]  ;;  %v1312_v50 = vpack.c.bf16 %v538_v42, %v536_v41  ;;  %v1306_v53 = vpack.c.bf16 %v324_v39, %v322_v38  ;;  %s1641_s14 = scalar_lea.vmem %s2182_s0, %s1178_s26  ;;  %s2120_s16 = scalar_lea.vmem %s2189_s7, %s1178_s26 }
  0x10   : > { %v542_v47 = vld [vmem:[%s2185_s3 + $0x38] sm:$0xff]  ;;  %v327_v48 = vld [vmem:[%s2183_s1 + $0xe8] sm:$0xff]  ;;  %v539_v51 = vld [vmem:[%s2185_s3 + $0x20] sm:$0xff]  ;;  %v1314_v54 = vpack.c.bf16 %v537_v45, %v535_v43 }
  0x11   : > { %1291 = vmatpush1.bf16.msra.mxu0 %v1290_v20  ;;  %v329_v49 = vld [vmem:[%s2183_s1 + $0xf8] sm:$0xff]  ;;  %v541_v52 = vld [vmem:[%s2185_s3 + $0x30] sm:$0xff]  ;;  %v1316_v55 = vpack.c.bf16 %v542_v47, %v540_v46  ;;  %v544_v56 = vld [vmem:[%s2185_s3 + $0x48] sm:$0xff]  ;;  %1313 = vmatprep.subr.bf16.mxu1 %v1312_v50 }
  0x12   : > { %1293 = vmatprep.subr.bf16.mxu0 %v1292_v21  ;;  %v546_v57 = vld [vmem:[%s2185_s3 + $0x58] sm:$0xff]  ;;  %v1308_v58 = vpack.c.bf16 %v329_v49, %v327_v48  ;;  %v326_v59 = vld [vmem:[%s2183_s1 + $0xe0] sm:$0xff]  ;;  %v328_v60 = vld [vmem:[%s2183_s1 + $0xf0] sm:$0xff]  ;;  %1315 = vmatpush1.bf16.msra.mxu1 %v1314_v54  ;;  %v1318_v61 = vpack.c.bf16 %v541_v52, %v539_v51 }
  0x13   : > { %1317 = vmatprep.subr.bf16.mxu1 %v1316_v55  ;;  %v1320_v62 = vpack.c.bf16 %v546_v57, %v544_v56  ;;  %v543_v63 = vld [vmem:[%s2185_s3 + $0x40] sm:$0xff]  ;;  %v545_v0 = vld [vmem:[%s2185_s3 + $0x50] sm:$0xff]  ;;  %v1310_v1 = vpack.c.bf16 %v328_v60, %v326_v59  ;;  %v548_v2 = vld [vmem:[%s2185_s3 + $0x68] sm:$0xff] }
  0x14   : > { %v550_v3 = vld [vmem:[%s2185_s3 + $0x78] sm:$0xff]  ;;  %v1322_v4 = vpack.c.bf16 %v545_v0, %v543_v63  ;;  %v547_v6 = vld [vmem:[%s2185_s3 + $0x60] sm:$0xff]  ;;  %v549_v8 = vld [vmem:[%s2185_s3 + $0x70] sm:$0xff] }
  0x15   : > { %1295 = vmatpush1.bf16.msra.mxu0 %v1294_v26  ;;  %v1324_v5 = vpack.c.bf16 %v550_v3, %v548_v2  ;;  %v1650_v9 = vld [vmem:[%s1641_s14] sm:$0xff]  ;;  %v552_v10 = vld [vmem:[%s2185_s3 + $0x88] sm:$0xff]  ;;  %v554_v11 = vld [vmem:[%s2185_s3 + $0x98] sm:$0xff]  ;;  %v1326_v12 = vpack.c.bf16 %v549_v8, %v547_v6 }
  0x16   : > { %1297 = vmatprep.subr.bf16.mxu0 %v1296_v27  ;;  %1319 = vmatpush1.bf16.msra.mxu1 %v1318_v61  ;;  %v1328_v13 = vpack.c.bf16 %v554_v11, %v552_v10  ;;  %v551_v14 = vld [vmem:[%s2185_s3 + $0x80] sm:$0xff]  ;;  %v553_v15 = vld [vmem:[%s2185_s3 + $0x90] sm:$0xff]  ;;  %v1667_v16 = vld [vmem:[%s1641_s14 + $0x8] sm:$0xff]  ;;  %vm1004_vm0 = vcmp.ne.f32.partialorder %v1650_v9, 0.0 }
  0x17   : > { %1321 = vmatprep.subr.bf16.mxu1 %v1320_v62  ;;  %v556_v17 = vld [vmem:[%s2185_s3 + $0xa8] sm:$0xff]  ;;  %v558_v18 = vld [vmem:[%s2185_s3 + $0xb8] sm:$0xff]  ;;  %v1330_v19 = vpack.c.bf16 %v553_v15, %v551_v14  ;;  %v555_v21 = vld [vmem:[%s2185_s3 + $0xa0] sm:$0xff]  ;;  %vm1005_vm1 = vcmp.ne.f32.partialorder %v1667_v16, 0.0 }
  0x18   : > { %v1332_v20 = vpack.c.bf16 %v558_v18, %v556_v17  ;;  %v557_v22 = vld [vmem:[%s2185_s3 + $0xb0] sm:$0xff]  ;;  %v560_v24 = vld [vmem:[%s2185_s3 + $0xc8] sm:$0xff]  ;;  %v562_v25 = vld [vmem:[%s2185_s3 + $0xd8] sm:$0xff] }
  0x19   : > { %1299 = vmatpush1.bf16.msra.mxu0 %v1298_v32  ;;  %v1684_v23 = vld [vmem:[%s1641_s14 + $0x10] sm:$0xff]  ;;  %v1334_v26 = vpack.c.bf16 %v557_v22, %v555_v21  ;;  %v1336_v27 = vpack.c.bf16 %v562_v25, %v560_v24  ;;  %v559_v28 = vld [vmem:[%s2185_s3 + $0xc0] sm:$0xff]  ;;  %v1701_v30 = vld [vmem:[%s1641_s14 + $0x18] sm:$0xff] }
  0x1a   : > { %1301 = vmatprep.subr.bf16.mxu0 %v1300_v33  ;;  %1323 = vmatpush1.bf16.msra.mxu1 %v1322_v4  ;;  %v561_v29 = vld [vmem:[%s2185_s3 + $0xd0] sm:$0xff]  ;;  %v564_v31 = vld [vmem:[%s2185_s3 + $0xe8] sm:$0xff]  ;;  %v566_v32 = vld [vmem:[%s2185_s3 + $0xf8] sm:$0xff]  ;;  %vm1006_vm2 = vcmp.ne.f32.partialorder %v1684_v23, 0.0  ;;  %vm1007_vm3 = vcmp.ne.f32.partialorder %v1701_v30, 0.0 }
  0x1b   : > { %1325 = vmatprep.subr.bf16.mxu1 %v1324_v5  ;;  %v1338_v33 = vpack.c.bf16 %v561_v29, %v559_v28  ;;  %v1340_v34 = vpack.c.bf16 %v566_v32, %v564_v31  ;;  %v563_v35 = vld [vmem:[%s2185_s3 + $0xe0] sm:$0xff]  ;;  %v565_v36 = vld [vmem:[%s2185_s3 + $0xf0] sm:$0xff]  ;;  %v568_v38 = vld [vmem:[%s2185_s3 + $0x108] sm:$0xff] }
  0x1c   : > { %v1718_v37 = vld [vmem:[%s1641_s14 + $0x20] sm:$0xff]  ;;  %v570_v39 = vld [vmem:[%s2185_s3 + $0x118] sm:$0xff]  ;;  %v569_v43 = vld [vmem:[%s2185_s3 + $0x110] sm:$0xff] }
  0x1d   : > { %1303 = vmatpush1.bf16.msra.mxu0 %v1302_v40  ;;  %v1342_v40 = vpack.c.bf16 %v565_v36, %v563_v35  ;;  %v1344_v41 = vpack.c.bf16 %v570_v39, %v568_v38  ;;  %v567_v42 = vld [vmem:[%s2185_s3 + $0x100] sm:$0xff]  ;;  %v572_v45 = vld [vmem:[%s2185_s3 + $0x128] sm:$0xff]  ;;  %v574_v46 = vld [vmem:[%s2185_s3 + $0x138] sm:$0xff]  ;;  %vm1008_vm4 = vcmp.ne.f32.partialorder %v1718_v37, 0.0 }
  0x1e   : > { %1305 = vmatprep.subr.bf16.mxu0 %v1304_v44  ;;  %1327 = vmatpush1.bf16.msra.mxu1 %v1326_v12  ;;  %v1735_v44 = vld [vmem:[%s1641_s14 + $0x28] sm:$0xff]  ;;  %v1346_v47 = vpack.c.bf16 %v569_v43, %v567_v42  ;;  %v1348_v48 = vpack.c.bf16 %v574_v46, %v572_v45  ;;  %v571_v49 = vld [vmem:[%s2185_s3 + $0x120] sm:$0xff]  ;;  %v573_v50 = vld [vmem:[%s2185_s3 + $0x130] sm:$0xff] }
  0x1f   : > { %1329 = vmatprep.subr.bf16.mxu1 %v1328_v13  ;;  %v1752_v51 = vld [vmem:[%s1641_s14 + $0x30] sm:$0xff]  ;;  %v576_v52 = vld [vmem:[%s2185_s3 + $0x148] sm:$0xff]  ;;  %v1350_v54 = vpack.c.bf16 %v573_v50, %v571_v49  ;;  %v575_v56 = vld [vmem:[%s2185_s3 + $0x140] sm:$0xff]  ;;  %vm1009_vm5 = vcmp.ne.f32.partialorder %v1735_v44, 0.0 }
  0x20   : > { %v577_v57 = vld [vmem:[%s2185_s3 + $0x150] sm:$0xff]  ;;  %v580_v59 = vld [vmem:[%s2185_s3 + $0x168] sm:$0xff]  ;;  %v582_v60 = vld [vmem:[%s2185_s3 + $0x178] sm:$0xff]  ;;  %vm1010_vm6 = vcmp.ne.f32.partialorder %v1752_v51, 0.0 }
  0x21   : > { %1307 = vmatpush1.bf16.msra.mxu0 %v1306_v53  ;;  %v578_v53 = vld [vmem:[%s2185_s3 + $0x158] sm:$0xff]  ;;  %v1354_v61 = vpack.c.bf16 %v577_v57, %v575_v56  ;;  %v1356_v62 = vpack.c.bf16 %v582_v60, %v580_v59  ;;  %v579_v63 = vld [vmem:[%s2185_s3 + $0x160] sm:$0xff]  ;;  %v581_v0 = vld [vmem:[%s2185_s3 + $0x170] sm:$0xff] }
  0x22   : > { %1309 = vmatprep.subr.bf16.mxu0 %v1308_v58  ;;  %1331 = vmatpush1.bf16.msra.mxu1 %v1330_v19  ;;  %v1352_v55 = vpack.c.bf16 %v578_v53, %v576_v52  ;;  %v1769_v58 = vld [vmem:[%s1641_s14 + $0x38] sm:$0xff]  ;;  %v584_v2 = vld [vmem:[%s2185_s3 + $0x188] sm:$0xff]  ;;  %v1358_v4 = vpack.c.bf16 %v581_v0, %v579_v63  ;;  %v583_v6 = vld [vmem:[%s2185_s3 + $0x180] sm:$0xff] }
  0x23   : > { %1333 = vmatprep.subr.bf16.mxu1 %v1332_v20  ;;  %v586_v3 = vld [vmem:[%s2185_s3 + $0x198] sm:$0xff]  ;;  %v585_v8 = vld [vmem:[%s2185_s3 + $0x190] sm:$0xff]  ;;  %v1803_v10 = vld [vmem:[%s1641_s14 + $0x48] sm:$0xff]  ;;  %vm1011_vm7 = vcmp.ne.f32.partialorder %v1769_v58, 0.0 }
  0x24   : > { %v1360_v5 = vpack.c.bf16 %v586_v3, %v584_v2  ;;  %v588_v11 = vld [vmem:[%s2185_s3 + $0x1a8] sm:$0xff]  ;;  %v590_v12 = vld [vmem:[%s2185_s3 + $0x1b8] sm:$0xff]  ;;  %v1362_v13 = vpack.c.bf16 %v585_v8, %v583_v6  ;;  %v587_v15 = vld [vmem:[%s2185_s3 + $0x1a0] sm:$0xff]  ;;  %vm1013_vm9 = vcmp.ne.f32.partialorder %v1803_v10, 0.0 }
  0x25   : > { %1311 = vmatpush1.bf16.msra.mxu0 %v1310_v1  ;;  %v1786_v1 = vld [vmem:[%s1641_s14 + $0x40] sm:$0xff]  ;;  %v1364_v14 = vpack.c.bf16 %v590_v12, %v588_v11  ;;  %v589_v17 = vld [vmem:[%s2185_s3 + $0x1b0] sm:$0xff]  ;;  %v592_v19 = vld [vmem:[%s2185_s3 + $0x1c8] sm:$0xff] }
  0x26   : > { %1335 = vmatpush1.bf16.msra.mxu1 %v1334_v26  ;;  %v1820_v18 = vld [vmem:[%s1641_s14 + $0x50] sm:$0xff]  ;;  %v594_v20 = vld [vmem:[%s2185_s3 + $0x1d8] sm:$0xff]  ;;  %v1366_v21 = vpack.c.bf16 %v589_v17, %v587_v15  ;;  %v1836_v25 = vld [vmem:[%s1641_s14 + $0x60] sm:$0xff]  ;;  %vm1012_vm8 = vcmp.ne.f32.partialorder %v1786_v1, 0.0 }
  0x27   : > { %1337 = vmatprep.subr.bf16.mxu1 %v1336_v27  ;;  %v1368_v22 = vpack.c.bf16 %v594_v20, %v592_v19  ;;  %v1831_v24 = vld [vmem:[%s1641_s14 + $0x58] sm:$0xff]  ;;  %v1841_v26 = vld [vmem:[%s1641_s14 + $0x68] sm:$0xff]  ;;  %v1846_v27 = vld [vmem:[%s1641_s14 + $0x70] sm:$0xff]  ;;  %vm1014_vm10 = vcmp.ne.f32.partialorder %v1820_v18, 0.0  ;;  %vm1016_vm12 = vcmp.ne.f32.partialorder %v1836_v25, 0.0 }
  0x28   : > { %407 = vmatmul.mubr.f32.vlgmr.msra.gmra.mrb[0].mxu0 %v1650_v9  ;;  %v297_v28 = vld [vmem:[%s1641_s14 + $0x78] sm:$0xff]  ;;  %v591_v29 = vld [vmem:[%s2185_s3 + $0x1c0] sm:$0xff]  ;;  %v593_v31 = vld [vmem:[%s2185_s3 + $0x1d0] sm:$0xff]  ;;  %vm1015_vm11 = vcmp.ne.f32.partialorder %v1831_v24, 0.0  ;;  %vm1017_vm13 = vcmp.ne.f32.partialorder %v1841_v26, 0.0  ;;  %vm1018_vm14 = vcmp.ne.f32.partialorder %v1846_v27, 0.0 }
  0x29   : > { %412 = vmatprep.mubr.f32.mxu0 %v1442_v7  ;;  %v1370_v32 = vpack.c.bf16 %v593_v31, %v591_v29  ;;  %v595_v36 = vld [vmem:[%s2185_s3 + $0x1e0] sm:$0xff]  ;;  %v597_v38 = vld [vmem:[%s2185_s3 + $0x1f0] sm:$0xff]  ;;  %v805_v45 = vld [vmem:[%s2187_s5 + $0x8] sm:$0xff]  ;;  %v332_v29 = vlaneseq }
  0x2a   : > { %1339 = vmatpush1.bf16.msra.mxu1 %v1338_v33  ;;  %v596_v33 = vld [vmem:[%s2185_s3 + $0x1e8] sm:$0xff]  ;;  %v1374_v39 = vpack.c.bf16 %v597_v38, %v595_v36  ;;  %v804_v42 = vld [vmem:[%s2187_s5] sm:$0xff]  ;;  %v822_v46 = vld [vmem:[%s2187_s5 + $0x90] sm:$0xff] }
  0x2b   : > { %1341 = vmatprep.subr.bf16.mxu1 %v1340_v34  ;;  %v598_v34 = vld [vmem:[%s2185_s3 + $0x1f8] sm:$0xff]  ;;  %v806_v50 = vld [vmem:[%s2187_s5 + $0x10] sm:$0xff]  ;;  %v824_v53 = vld [vmem:[%s2187_s5 + $0xa0] sm:$0xff]  ;;  %v1983_v31 = vshrl.u32 %v332_v29, 7 }
  0x2c   : > { %413 = vmatmul.mubr.f32.gmra.mrb[2].mxu0 %v1667_v16  ;;  %v1372_v35 = vpack.c.bf16 %v598_v34, %v596_v33  ;;  %v807_v52 = vld [vmem:[%s2187_s5 + $0x18] sm:$0xff]  ;;  %v808_v57 = vld [vmem:[%s2187_s5 + $0x20] sm:$0xff]  ;;  %v809_v59 = vld [vmem:[%s2187_s5 + $0x28] sm:$0xff]  ;;  %v1184_v16 = vsel %vm1006_vm2, 1.0, %v1442_v7 }
  0x2d   : > { %418 = vmatprep.mubr.f32.mxu0 %v1442_v7  ;;  %v826_v60 = vld [vmem:[%s2187_s5 + $0xb0] sm:$0xff]  ;;  %v811_v2 = vld [vmem:[%s2187_s5 + $0x38] sm:$0xff]  ;;  %v828_v3 = vld [vmem:[%s2187_s5 + $0xc0] sm:$0xff]  ;;  %v338_v34 = vsub.s32 1, %v1983_v31 }
  0x2e   : > { %1343 = vmatpush1.bf16.msra.mxu1 %v1342_v40  ;;  %v820_v40 = vld [vmem:[%s2187_s5 + $0x80] sm:$0xff]  ;;  %v810_v0 = vld [vmem:[%s2187_s5 + $0x30] sm:$0xff]  ;;  %v813_v11 = vld [vmem:[%s2187_s5 + $0x48] sm:$0xff] }
  0x2f   : > { %1345 = vmatprep.subr.bf16.mxu1 %v1344_v41  ;;  %v821_v41 = vld [vmem:[%s2187_s5 + $0x88] sm:$0xff]  ;;  %v812_v8 = vld [vmem:[%s2187_s5 + $0x40] sm:$0xff]  ;;  %v830_v12 = vld [vmem:[%s2187_s5 + $0xd0] sm:$0xff] }
  0x30   : > { %419 = vmatmul.mubr.f32.gmra.mrb[4].mxu0 %v1684_v23  ;;  %v1376_v43 = vpack.c.bf16 %v821_v41, %v820_v40  ;;  %v814_v17 = vld [vmem:[%s2187_s5 + $0x50] sm:$0xff]  ;;  %v815_v19 = vld [vmem:[%s2187_s5 + $0x58] sm:$0xff]  ;;  %v832_v20 = vld [vmem:[%s2187_s5 + $0xe0] sm:$0xff] }
  0x31   : > { %424 = vmatprep.mubr.f32.mxu0 %v1442_v7  ;;  %v330_v33 = vld [vmem:[%s2184_s2] sm:$0x3] }
  0x32   : > { %1347 = vmatpush1.bf16.msra.mxu1 %v1346_v47  ;;  %v823_v47 = vld [vmem:[%s2187_s5 + $0x98] sm:$0xff]  ;;  %1377 = vmatprep.subr.bf16.mxu0 %v1376_v43  ;;  %v1996_v36 = vrot.slane %v330_v33, %v338_v34 }
  0x33   : > { %1349 = vmatprep.subr.bf16.mxu1 %v1348_v48  ;;  %v1887_v48 = vpack.c.bf16 %v805_v45, %v804_v42  ;;  %v1889_v49 = vpack.c.bf16 %v823_v47, %v822_v46 }
  0x34   : > { %425 = vmatmul.mubr.f32.gmra.mrb[6].mxu0 %v1701_v30 }
  0x35   : > { %430 = vmatprep.mubr.f32.mxu0 %v1442_v7  ;;  %1379 = vmatpush3.bf16.msra.mxu0 %v1887_v48 }
  0x36   : > { %1351 = vmatpush1.bf16.msra.mxu1 %v1350_v54  ;;  %v825_v54 = vld [vmem:[%s2187_s5 + $0xa8] sm:$0xff]  ;;  %1381 = vmatprep.subr.bf16.mxu0 %v1889_v49 }
  0x37   : > { %1353 = vmatprep.subr.bf16.mxu1 %v1352_v55  ;;  %v1904_v55 = vpack.c.bf16 %v807_v52, %v806_v50  ;;  %v1907_v56 = vpack.c.bf16 %v825_v54, %v824_v53 }
  0x38   : > { %431 = vmatmul.mubr.f32.gmra.mrb[8].mxu0 %v1718_v37 }
  0x39   : > { %436 = vmatprep.mubr.f32.mxu0 %v1442_v7  ;;  %1383 = vmatpush3.bf16.msra.mxu0 %v1904_v55 }
  0x3a   : > { %1355 = vmatpush1.bf16.msra.mxu1 %v1354_v61  ;;  %v827_v61 = vld [vmem:[%s2187_s5 + $0xb8] sm:$0xff]  ;;  %1385 = vmatprep.subr.bf16.mxu0 %v1907_v56 }
  0x3b   : > { %1357 = vmatprep.subr.bf16.mxu1 %v1356_v62  ;;  %v1922_v62 = vpack.c.bf16 %v809_v59, %v808_v57  ;;  %v1925_v63 = vpack.c.bf16 %v827_v61, %v826_v60 }
  0x3c   : > { %437 = vmatmul.mubr.f32.gmra.mrb[10].mxu0 %v1735_v44 }
  0x3d   : > { %442 = vmatprep.mubr.f32.mxu0 %v1442_v7  ;;  %1387 = vmatpush3.bf16.msra.mxu0 %v1922_v62 }
  0x3e   : > { %1359 = vmatpush1.bf16.msra.mxu1 %v1358_v4  ;;  %v829_v4 = vld [vmem:[%s2187_s5 + $0xc8] sm:$0xff]  ;;  %1389 = vmatprep.subr.bf16.mxu0 %v1925_v63 }
  0x3f   : > { %1361 = vmatprep.subr.bf16.mxu1 %v1360_v5  ;;  %v1940_v5 = vpack.c.bf16 %v811_v2, %v810_v0  ;;  %v1943_v6 = vpack.c.bf16 %v829_v4, %v828_v3 }
  0x40   : > { %443 = vmatmul.mubr.f32.gmra.mrb[12].mxu0 %v1752_v51 }
  0x41   : > { %448 = vmatprep.mubr.f32.mxu0 %v1442_v7  ;;  %1391 = vmatpush3.bf16.msra.mxu0 %v1940_v5 }
  0x42   : > { %1363 = vmatpush1.bf16.msra.mxu1 %v1362_v13  ;;  %v831_v13 = vld [vmem:[%s2187_s5 + $0xd8] sm:$0xff]  ;;  %1393 = vmatprep.subr.bf16.mxu0 %v1943_v6 }
  0x43   : > { %1365 = vmatprep.subr.bf16.mxu1 %v1364_v14  ;;  %v1958_v14 = vpack.c.bf16 %v813_v11, %v812_v8  ;;  %v1961_v15 = vpack.c.bf16 %v831_v13, %v830_v12 }
  0x44   : > { %449 = vmatmul.mubr.f32.gmra.mrb[14].mxu0 %v1769_v58 }
  0x45   : > { %454 = vmatprep.mubr.f32.mxu0 %v1442_v7  ;;  %1395 = vmatpush3.bf16.msra.mxu0 %v1958_v14 }
  0x46   : > { %1367 = vmatpush1.bf16.msra.mxu1 %v1366_v21  ;;  %v833_v21 = vld [vmem:[%s2187_s5 + $0xe8] sm:$0xff]  ;;  %1397 = vmatprep.subr.bf16.mxu0 %v1961_v15 }
  0x47   : > { %1369 = vmatprep.subr.bf16.mxu1 %v1368_v22  ;;  %v1976_v22 = vpack.c.bf16 %v815_v19, %v814_v17 }
  0x48   : > { %455 = vmatmul.mubr.f32.gmra.mrb[16].mxu0 %v1786_v1 }
  0x49   : > { %460 = vmatprep.mubr.f32.mxu0 %v1442_v7  ;;  %1399 = vmatpush3.bf16.msra.mxu0 %v1976_v22 }
  0x4a   : > { %1371 = vmatpush1.bf16.msra.mxu1 %v1370_v32  ;;  %v334_v32 = vsub.s32 0, %v1983_v31 }
  0x4b   : > { %1373 = vmatprep.subr.bf16.mxu1 %v1372_v35 }
  0x4c   : > { %461 = vmatmul.mubr.f32.gmra.mrb[18].mxu0 %v1803_v10  ;;  %v1992_v35 = vrot.slane %v330_v33, %v334_v32 }
  0x4d   : > { %466 = vmatprep.mubr.f32.mxu0 %v1442_v7 }
  0x4e   : > { %1375 = vmatpush1.bf16.msra.mxu1 %v1374_v39 }
  0x4f   : > { %1408 = vmatprep.subr.bf16.mxu1 %v1376_v43 }
  0x50   : > { %467 = vmatmul.mubr.f32.gmra.mrb[20].mxu0 %v1820_v18 }
  0x51   : > { %472 = vmatprep.mubr.f32.mxu0 %v1442_v7 }
  0x54   : > { %473 = vmatmul.mubr.f32.gmra.mrb[22].mxu0 %v1831_v24 }
  0x55   : > { %478 = vmatprep.mubr.f32.mxu0 %v1442_v7 }
  0x58   : > { %479 = vmatmul.mubr.f32.gmra.mrb[24].mxu0 %v1836_v25 }
  0x59   : > { %484 = vmatprep.mubr.f32.mxu0 %v1442_v7 }
  0x5c   : > { %485 = vmatmul.mubr.f32.gmra.mrb[26].mxu0 %v1841_v26 }
  0x5d   : > { %490 = vmatprep.mubr.f32.mxu0 %v1442_v7 }
  0x60   : > { %491 = vmatmul.mubr.f32.gmra.mrb[28].mxu0 %v1846_v27 }
  0x61   : > { %496 = vmatprep.mubr.f32.mxu0 %v1442_v7 }
  0x64   : > { %497 = vmatmul.mubr.f32.gmra.mrb[30].mxu0 %v297_v28  ;;  %v1979_v28 = vpack.c.bf16 %v833_v21, %v832_v20 }
  0x66   : > { %1401 = vmatprep.subr.bf16.mxu0 %v1979_v28 }
  0xfb   : > { %v408_v38 = vpop.f32.mrb[0].mxu0 }
  0xfc   : > { %v409_v39 = vadd.f32 %v408_v38, %v1992_v35  ;;  %v410_v40 = vpop.f32.mrb[1].mxu0 }
  0xfd   : > { %v411_v41 = vadd.f32 %v410_v40, %v1996_v36 }
  0xfe   : > { %v503_v45 = vmax.f32 %v409_v39, 0.0 }
  0xff   : > { %v414_v42 = vpop.f32.mrb[2].mxu0  ;;  %v504_v43 = vmax.f32 %v411_v41, 0.0 }
 0x100   : > { %v415_v46 = vadd.f32 %v414_v42, %v1992_v35  ;;  %v416_v47 = vpop.f32.mrb[3].mxu0 }
 0x101   : > { %v417_v50 = vadd.f32 %v416_v47, %v1996_v36  ;;  %675 = vmatprep.mubr.f32.mxu1 %v504_v43 }
 0x102   : > { %676 = vmatmul.mubr.f32.vlgmr.msra.gmra.mrb[0].mxu1 %v503_v45  ;;  %v505_v54 = vmax.f32 %v415_v46, 0.0 }
 0x103   : > { %v506_v52 = vmax.f32 %v417_v50, 0.0  ;;  %v420_v53 = vpop.f32.mrb[4].mxu0  ;;  %1416 = vmatpush3.bf16.msra.mxu1 %v1887_v48 }
 0x104   : > { %v421_v57 = vadd.f32 %v420_v53, %v1992_v35  ;;  %v422_v59 = vpop.f32.mrb[5].mxu0  ;;  %1409 = vmatprep.subr.bf16.mxu1 %v1889_v49 }
 0x105   : > { %v423_v60 = vadd.f32 %v422_v59, %v1996_v36  ;;  %681 = vmatprep.mubr.f32.mxu1 %v506_v52 }
 0x106   : > { %682 = vmatmul.mubr.f32.gmra.mrb[2].mxu1 %v505_v54  ;;  %v507_v2 = vmax.f32 %v421_v57, 0.0 }
 0x107   : > { %v508_v61 = vmax.f32 %v423_v60, 0.0  ;;  %v426_v0 = vpop.f32.mrb[6].mxu0  ;;  %1417 = vmatpush3.bf16.msra.mxu1 %v1904_v55 }
 0x108   : > { %v427_v3 = vadd.f32 %v426_v0, %v1992_v35  ;;  %v428_v4 = vpop.f32.mrb[7].mxu0  ;;  %1410 = vmatprep.subr.bf16.mxu1 %v1907_v56 }
 0x109   : > { %v429_v48 = vadd.f32 %v428_v4, %v1996_v36  ;;  %687 = vmatprep.mubr.f32.mxu1 %v508_v61 }
 0x10a   : > { %688 = vmatmul.mubr.f32.gmra.mrb[4].mxu1 %v507_v2  ;;  %v509_v11 = vmax.f32 %v427_v3, 0.0 }
 0x10b   : > { %v510_v8 = vmax.f32 %v429_v48, 0.0  ;;  %v432_v49 = vpop.f32.mrb[8].mxu0  ;;  %1418 = vmatpush3.bf16.msra.mxu1 %v1922_v62 }
 0x10c   : > { %v433_v12 = vadd.f32 %v432_v49, %v1992_v35  ;;  %v434_v13 = vpop.f32.mrb[9].mxu0  ;;  %1411 = vmatprep.subr.bf16.mxu1 %v1925_v63 }
 0x10d   : > { %v435_v55 = vadd.f32 %v434_v13, %v1996_v36  ;;  %693 = vmatprep.mubr.f32.mxu1 %v510_v8 }
 0x10e   : > { %694 = vmatmul.mubr.f32.gmra.mrb[6].mxu1 %v509_v11  ;;  %v511_v19 = vmax.f32 %v433_v12, 0.0 }
 0x10f   : > { %v512_v17 = vmax.f32 %v435_v55, 0.0  ;;  %v438_v56 = vpop.f32.mrb[10].mxu0  ;;  %1419 = vmatpush3.bf16.msra.mxu1 %v1940_v5 }
 0x110   : > { %v439_v20 = vadd.f32 %v438_v56, %v1992_v35  ;;  %v440_v21 = vpop.f32.mrb[11].mxu0  ;;  %1412 = vmatprep.subr.bf16.mxu1 %v1943_v6 }
 0x111   : > { %v441_v62 = vadd.f32 %v440_v21, %v1996_v36  ;;  %699 = vmatprep.mubr.f32.mxu1 %v512_v17 }
 0x112   : > { %700 = vmatmul.mubr.f32.gmra.mrb[8].mxu1 %v511_v19  ;;  %v513_v33 = vmax.f32 %v439_v20, 0.0 }
 0x113   : > { %v514_v29 = vmax.f32 %v441_v62, 0.0  ;;  %v444_v63 = vpop.f32.mrb[12].mxu0  ;;  %1420 = vmatpush3.bf16.msra.mxu1 %v1958_v14 }
 0x114   : > { %v445_v38 = vadd.f32 %v444_v63, %v1992_v35  ;;  %v446_v39 = vpop.f32.mrb[13].mxu0  ;;  %1413 = vmatprep.subr.bf16.mxu1 %v1961_v15 }
 0x115   : > { %v447_v5 = vadd.f32 %v446_v39, %v1996_v36  ;;  %705 = vmatprep.mubr.f32.mxu1 %v514_v29 }
 0x116   : > { %706 = vmatmul.mubr.f32.gmra.mrb[10].mxu1 %v513_v33  ;;  %v515_v41 = vmax.f32 %v445_v38, 0.0 }
 0x117   : > { %v516_v40 = vmax.f32 %v447_v5, 0.0  ;;  %v450_v6 = vpop.f32.mrb[14].mxu0  ;;  %1421 = vmatpush3.bf16.msra.mxu1 %v1976_v22 }
 0x118   : > { %v451_v42 = vadd.f32 %v450_v6, %v1992_v35  ;;  %v452_v43 = vpop.f32.mrb[15].mxu0  ;;  %1414 = vmatprep.subr.bf16.mxu1 %v1979_v28 }
 0x119   : > { %v453_v14 = vadd.f32 %v452_v43, %v1996_v36  ;;  %711 = vmatprep.mubr.f32.mxu1 %v516_v40 }
 0x11a   : > { %712 = vmatmul.mubr.f32.gmra.mrb[12].mxu1 %v515_v41  ;;  %v517_v46 = vmax.f32 %v451_v42, 0.0 }
 0x11b   : > { %v518_v45 = vmax.f32 %v453_v14, 0.0  ;;  %v456_v15 = vpop.f32.mrb[16].mxu0 }
 0x11c   : > { %v457_v47 = vadd.f32 %v456_v15, %v1992_v35  ;;  %v458_v50 = vpop.f32.mrb[17].mxu0 }
 0x11d   : > { %v459_v52 = vadd.f32 %v458_v50, %v1996_v36  ;;  %717 = vmatprep.mubr.f32.mxu1 %v518_v45 }
 0x11e   : > { %718 = vmatmul.mubr.f32.gmra.mrb[14].mxu1 %v517_v46  ;;  %v519_v54 = vmax.f32 %v457_v47, 0.0 }
 0x11f   : > { %v520_v22 = vmax.f32 %v459_v52, 0.0  ;;  %v462_v53 = vpop.f32.mrb[18].mxu0 }
 0x120   : > { %v463_v57 = vadd.f32 %v462_v53, %v1992_v35  ;;  %v464_v28 = vpop.f32.mrb[19].mxu0  ;;  %v816_v53 = vld [vmem:[%s2187_s5 + $0x60] sm:$0xff] }
 0x121   : > { %v465_v59 = vadd.f32 %v464_v28, %v1996_v36  ;;  %723 = vmatprep.mubr.f32.mxu1 %v520_v22 }
 0x122   : > { %724 = vmatmul.mubr.f32.gmra.mrb[16].mxu1 %v519_v54  ;;  %v521_v0 = vmax.f32 %v463_v57, 0.0  ;;  %v817_v54 = vld [vmem:[%s2187_s5 + $0x68] sm:$0xff] }
 0x123   : > { %v522_v60 = vmax.f32 %v465_v59, 0.0  ;;  %v468_v61 = vpop.f32.mrb[20].mxu0  ;;  %v1402_v57 = vpack.c.bf16 %v817_v54, %v816_v53  ;;  %v818_v59 = vld [vmem:[%s2187_s5 + $0x70] sm:$0xff] }
 0x124   : > { %v469_v2 = vadd.f32 %v468_v61, %v1992_v35  ;;  %v470_v3 = vpop.f32.mrb[21].mxu0 }
 0x125   : > { %v471_v4 = vadd.f32 %v470_v3, %v1996_v36  ;;  %729 = vmatprep.mubr.f32.mxu1 %v522_v60  ;;  %1403 = vmatpush3.bf16.msra.mxu0 %v1402_v57  ;;  %v819_v60 = vld [vmem:[%s2187_s5 + $0x78] sm:$0xff] }
 0x126   : > { %730 = vmatmul.mubr.f32.gmra.mrb[18].mxu1 %v521_v0  ;;  %v523_v49 = vmax.f32 %v469_v2, 0.0  ;;  %v1406_v61 = vpack.c.bf16 %v819_v60, %v818_v59  ;;  %v599_v0 = vld [vmem:[%s2186_s4] sm:$0x3] }
 0x127   : > { %v524_v48 = vmax.f32 %v471_v4, 0.0  ;;  %v474_v8 = vpop.f32.mrb[22].mxu0  ;;  %1422 = vmatpush3.bf16.msra.mxu1 %v1402_v57  ;;  %v2065_v2 = vrot.slane %v599_v0, %v334_v32  ;;  %v2069_v3 = vrot.slane %v599_v0, %v338_v34 }
 0x128   : > { %v475_v11 = vadd.f32 %v474_v8, %v1992_v35  ;;  %v476_v12 = vpop.f32.mrb[23].mxu0 }
 0x129   : > { %v477_v13 = vadd.f32 %v476_v12, %v1996_v36  ;;  %735 = vmatprep.mubr.f32.mxu1 %v524_v48 }
 0x12a   : > { %736 = vmatmul.mubr.f32.gmra.mrb[20].mxu1 %v523_v49  ;;  %v525_v56 = vmax.f32 %v475_v11, 0.0 }
 0x12b   : > { %v526_v55 = vmax.f32 %v477_v13, 0.0  ;;  %v480_v17 = vpop.f32.mrb[24].mxu0 }
 0x12c   : > { %v481_v19 = vadd.f32 %v480_v17, %v1992_v35  ;;  %v482_v20 = vpop.f32.mrb[25].mxu0 }
 0x12d   : > { %v483_v21 = vadd.f32 %v482_v20, %v1996_v36  ;;  %741 = vmatprep.mubr.f32.mxu1 %v526_v55 }
 0x12e   : > { %742 = vmatmul.mubr.f32.gmra.mrb[22].mxu1 %v525_v56  ;;  %v527_v63 = vmax.f32 %v481_v19, 0.0 }
 0x12f   : > { %v528_v62 = vmax.f32 %v483_v21, 0.0  ;;  %v486_v29 = vpop.f32.mrb[26].mxu0 }
 0x130   : > { %v487_v33 = vadd.f32 %v486_v29, %v1992_v35  ;;  %v488_v38 = vpop.f32.mrb[27].mxu0 }
 0x131   : > { %v489_v39 = vadd.f32 %v488_v38, %v1996_v36  ;;  %747 = vmatprep.mubr.f32.mxu1 %v528_v62 }
 0x132   : > { %748 = vmatmul.mubr.f32.gmra.mrb[24].mxu1 %v527_v63  ;;  %v529_v6 = vmax.f32 %v487_v33, 0.0 }
 0x133   : > { %v530_v5 = vmax.f32 %v489_v39, 0.0  ;;  %v492_v40 = vpop.f32.mrb[28].mxu0 }
 0x134   : > { %v493_v41 = vadd.f32 %v492_v40, %v1992_v35  ;;  %v494_v42 = vpop.f32.mrb[29].mxu0 }
 0x135   : > { %v495_v43 = vadd.f32 %v494_v42, %v1996_v36  ;;  %753 = vmatprep.mubr.f32.mxu1 %v530_v5 }
 0x136   : > { %754 = vmatmul.mubr.f32.gmra.mrb[26].mxu1 %v529_v6  ;;  %v531_v15 = vmax.f32 %v493_v41, 0.0 }
 0x137   : > { %v532_v14 = vmax.f32 %v495_v43, 0.0  ;;  %v498_v45 = vpop.f32.mrb[30].mxu0 }
 0x138   : > { %v499_v46 = vadd.f32 %v498_v45, %v1992_v35  ;;  %v500_v47 = vpop.f32.mrb[31].mxu0  ;;  %v834_v35 = vld [vmem:[%s2187_s5 + $0xf0] sm:$0xff] }
 0x139   : > { %v501_v50 = vadd.f32 %v500_v47, %v1996_v36  ;;  %759 = vmatprep.mubr.f32.mxu1 %v532_v14  ;;  %v835_v36 = vld [vmem:[%s2187_s5 + $0xf8] sm:$0xff] }
 0x13a   : > { %760 = vmatmul.mubr.f32.gmra.mrb[28].mxu1 %v531_v15  ;;  %v533_v22 = vmax.f32 %v499_v46, 0.0  ;;  %v1404_v28 = vpack.c.bf16 %v835_v36, %v834_v35 }
 0x13b   : > { %v534_v52 = vmax.f32 %v501_v50, 0.0 }
 0x13c   : > { %1405 = vmatprep.subr.bf16.mxu0 %v1404_v28  ;;  %1415 = vmatprep.subr.bf16.mxu1 %v1404_v28 }
 0x13d   : > { %765 = vmatprep.mubr.f32.mxu1 %v534_v52  ;;  %1407 = vmatpush3.bf16.msra.mxu0 %v1406_v61 }
 0x13e   : > { %766 = vmatmul.mubr.f32.gmra.mrb[30].mxu1 %v533_v22 }
 0x13f   : > { %1423 = vmatpush3.bf16.msra.mxu1 %v1406_v61 }
 0x1d5   : > { %v677_v4 = vpop.f32.mrb[0].mxu1 }
 0x1d6   : > { %v678_v48 = vadd.f32 %v677_v4, %v2065_v2  ;;  %v679_v8 = vpop.f32.mrb[1].mxu1 }
 0x1d7   : > { %v680_v49 = vadd.f32 %v679_v8, %v2069_v3 }
 0x1d8   : > { %v772_v13 = vmax.f32 %v678_v48, 0.0 }
 0x1d9   : > { %v773_v11 = vmax.f32 %v680_v49, 0.0  ;;  %v683_v12 = vpop.f32.mrb[2].mxu1 }
 0x1da   : > { %v684_v55 = vadd.f32 %v683_v12, %v2065_v2  ;;  %v685_v17 = vpop.f32.mrb[3].mxu1 }
 0x1db   : > { %v686_v56 = vadd.f32 %v685_v17, %v2069_v3  ;;  %907 = vmatprep.mubr.f32.mxu0 %v773_v11 }
 0x1dc   : > { %908 = vmatmul.mubr.f32.vlgmr.msra.gmra.mrb[32].mxu0 %v772_v13  ;;  %v774_v34 = vmax.f32 %v684_v55, 0.0 }
 0x1dd   : > { %v775_v32 = vmax.f32 %v686_v56, 0.0  ;;  %v689_v31 = vpop.f32.mrb[4].mxu1 }
 0x1de   : > { %v690_v19 = vadd.f32 %v689_v31, %v2065_v2  ;;  %v691_v20 = vpop.f32.mrb[5].mxu1 }
 0x1df   : > { %v692_v21 = vadd.f32 %v691_v20, %v2069_v3  ;;  %912 = vmatprep.mubr.f32.mxu0 %v775_v32 }
 0x1e0   : > { %913 = vmatmul.mubr.f32.gmra.mrb[34].mxu0 %v774_v34  ;;  %v776_v63 = vmax.f32 %v690_v19, 0.0 }
 0x1e1   : > { %v777_v62 = vmax.f32 %v692_v21, 0.0  ;;  %v695_v29 = vpop.f32.mrb[6].mxu1 }
 0x1e2   : > { %v696_v33 = vadd.f32 %v695_v29, %v2065_v2  ;;  %v697_v38 = vpop.f32.mrb[7].mxu1 }
 0x1e3   : > { %v698_v39 = vadd.f32 %v697_v38, %v2069_v3  ;;  %917 = vmatprep.mubr.f32.mxu0 %v777_v62 }
 0x1e4   : > { %918 = vmatmul.mubr.f32.gmra.mrb[36].mxu0 %v776_v63  ;;  %v778_v6 = vmax.f32 %v696_v33, 0.0 }
 0x1e5   : > { %v779_v5 = vmax.f32 %v698_v39, 0.0  ;;  %v701_v40 = vpop.f32.mrb[8].mxu1 }
 0x1e6   : > { %v702_v41 = vadd.f32 %v701_v40, %v2065_v2  ;;  %v703_v42 = vpop.f32.mrb[9].mxu1 }
 0x1e7   : > { %v704_v43 = vadd.f32 %v703_v42, %v2069_v3  ;;  %922 = vmatprep.mubr.f32.mxu0 %v779_v5 }
 0x1e8   : > { %923 = vmatmul.mubr.f32.gmra.mrb[38].mxu0 %v778_v6  ;;  %v780_v15 = vmax.f32 %v702_v41, 0.0 }
 0x1e9   : > { %v781_v14 = vmax.f32 %v704_v43, 0.0  ;;  %v707_v45 = vpop.f32.mrb[10].mxu1 }
 0x1ea   : > { %v708_v46 = vadd.f32 %v707_v45, %v2065_v2  ;;  %v709_v47 = vpop.f32.mrb[11].mxu1 }
 0x1eb   : > { %v710_v50 = vadd.f32 %v709_v47, %v2069_v3  ;;  %927 = vmatprep.mubr.f32.mxu0 %v781_v14 }
 0x1ec   : > { %928 = vmatmul.mubr.f32.gmra.mrb[40].mxu0 %v780_v15  ;;  %v782_v53 = vmax.f32 %v708_v46, 0.0 }
 0x1ed   : > { %v783_v52 = vmax.f32 %v710_v50, 0.0  ;;  %v713_v22 = vpop.f32.mrb[12].mxu1 }
 0x1ee   : > { %v714_v54 = vadd.f32 %v713_v22, %v2065_v2  ;;  %v715_v57 = vpop.f32.mrb[13].mxu1 }
 0x1ef   : > { %v716_v35 = vadd.f32 %v715_v57, %v2069_v3  ;;  %932 = vmatprep.mubr.f32.mxu0 %v783_v52 }
 0x1f0   : > { %933 = vmatmul.mubr.f32.gmra.mrb[42].mxu0 %v782_v53  ;;  %v784_v59 = vmax.f32 %v714_v54, 0.0 }
 0x1f1   : > { %v785_v36 = vmax.f32 %v716_v35, 0.0  ;;  %v719_v28 = vpop.f32.mrb[14].mxu1 }
 0x1f2   : > { %v720_v60 = vadd.f32 %v719_v28, %v2065_v2  ;;  %v721_v61 = vpop.f32.mrb[15].mxu1 }
 0x1f3   : > { %v722_v0 = vadd.f32 %v721_v61, %v2069_v3  ;;  %937 = vmatprep.mubr.f32.mxu0 %v785_v36 }
 0x1f4   : > { %938 = vmatmul.mubr.f32.gmra.mrb[44].mxu0 %v784_v59  ;;  %v786_v8 = vmax.f32 %v720_v60, 0.0 }
 0x1f5   : > { %v787_v4 = vmax.f32 %v722_v0, 0.0  ;;  %v725_v48 = vpop.f32.mrb[16].mxu1 }
 0x1f6   : > { %v726_v49 = vadd.f32 %v725_v48, %v2065_v2  ;;  %v727_v11 = vpop.f32.mrb[17].mxu1 }
 0x1f7   : > { %v728_v12 = vadd.f32 %v727_v11, %v2069_v3  ;;  %942 = vmatprep.mubr.f32.mxu0 %v787_v4 }
 0x1f8   : > { %943 = vmatmul.mubr.f32.gmra.mrb[46].mxu0 %v786_v8  ;;  %v788_v17 = vmax.f32 %v726_v49, 0.0 }
 0x1f9   : > { %v789_v13 = vmax.f32 %v728_v12, 0.0  ;;  %v731_v55 = vpop.f32.mrb[18].mxu1  ;;  %v1182_v12 = vsel %vm1004_vm0, 1.0, %v1442_v7 }
 0x1fa   : > { %v732_v56 = vadd.f32 %v731_v55, %v2065_v2  ;;  %v733_v32 = vpop.f32.mrb[19].mxu1  ;;  %v1052_v55 = vsub.f32 1.0, %v1182_v12 }
 0x1fb   : > { %v734_v31 = vadd.f32 %v733_v32, %v2069_v3  ;;  %947 = vmatprep.mubr.f32.mxu0 %v789_v13  ;;  %v2108_v13 = vld [vmem:[%s2188_s6] ss:$0 sm:$0xff]  ;;  %v1183_v32 = vsel %vm1005_vm1, 1.0, %v1442_v7 }
 0x1fc   : > { %948 = vmatmul.mubr.f32.gmra.mrb[48].mxu0 %v788_v17  ;;  %v790_v20 = vmax.f32 %v732_v56, 0.0 }
 0x1fd   : > { %v791_v34 = vmax.f32 %v734_v31, 0.0  ;;  %v737_v19 = vpop.f32.mrb[20].mxu1 }
 0x1fe   : > { %v738_v21 = vadd.f32 %v737_v19, %v2065_v2  ;;  %v739_v62 = vpop.f32.mrb[21].mxu1  ;;  %v1053_v19 = vsub.f32 1.0, %v1183_v32 }
 0x1ff   : > { %v740_v29 = vadd.f32 %v739_v62, %v2069_v3  ;;  %952 = vmatprep.mubr.f32.mxu0 %v791_v34 }
 0x200   : > { %953 = vmatmul.mubr.f32.gmra.mrb[50].mxu0 %v790_v20  ;;  %v792_v38 = vmax.f32 %v738_v21, 0.0 }
 0x201   : > { %v793_v63 = vmax.f32 %v740_v29, 0.0  ;;  %v743_v33 = vpop.f32.mrb[22].mxu1 }
 0x202   : > { %v744_v39 = vadd.f32 %v743_v33, %v2065_v2  ;;  %v745_v5 = vpop.f32.mrb[23].mxu1 }
 0x203   : > { %v746_v40 = vadd.f32 %v745_v5, %v2069_v3  ;;  %957 = vmatprep.mubr.f32.mxu0 %v793_v63 }
 0x204   : > { %958 = vmatmul.mubr.f32.gmra.mrb[52].mxu0 %v792_v38  ;;  %v794_v42 = vmax.f32 %v744_v39, 0.0  ;;  %v1054_v38 = vsub.f32 1.0, %v1184_v16 }
 0x205   : > { %v795_v6 = vmax.f32 %v746_v40, 0.0  ;;  %v749_v41 = vpop.f32.mrb[24].mxu1 }
 0x206   : > { %v750_v43 = vadd.f32 %v749_v41, %v2065_v2  ;;  %v751_v14 = vpop.f32.mrb[25].mxu1 }
 0x207   : > { %v752_v45 = vadd.f32 %v751_v14, %v2069_v3  ;;  %962 = vmatprep.mubr.f32.mxu0 %v795_v6  ;;  %v1185_v6 = vsel %vm1007_vm3, 1.0, %v1442_v7 }
 0x208   : > { %963 = vmatmul.mubr.f32.gmra.mrb[54].mxu0 %v794_v42  ;;  %v796_v47 = vmax.f32 %v750_v43, 0.0  ;;  %v1055_v30 = vsub.f32 1.0, %v1185_v6 }
 0x209   : > { %v797_v15 = vmax.f32 %v752_v45, 0.0  ;;  %v755_v46 = vpop.f32.mrb[26].mxu1 }
 0x20a   : > { %v756_v50 = vadd.f32 %v755_v46, %v2065_v2  ;;  %v757_v52 = vpop.f32.mrb[27].mxu1 }
 0x20b   : > { %v758_v22 = vadd.f32 %v757_v52, %v2069_v3  ;;  %967 = vmatprep.mubr.f32.mxu1 %v797_v15 }
 0x20c   : > { %968 = vmatmul.mubr.f32.vlgmr.msra.gmra.mrb[32].mxu1 %v796_v47  ;;  %v798_v57 = vmax.f32 %v756_v50, 0.0  ;;  %v1186_v47 = vsel %vm1008_vm4, 1.0, %v1442_v7 }
 0x20d   : > { %v799_v53 = vmax.f32 %v758_v22, 0.0  ;;  %v761_v54 = vpop.f32.mrb[28].mxu1  ;;  %v1056_v37 = vsub.f32 1.0, %v1186_v47 }
 0x20e   : > { %v762_v35 = vadd.f32 %v761_v54, %v2065_v2  ;;  %v763_v36 = vpop.f32.mrb[29].mxu1 }
 0x20f   : > { %v764_v28 = vadd.f32 %v763_v36, %v2069_v3  ;;  %972 = vmatprep.mubr.f32.mxu1 %v799_v53  ;;  %v1187_v36 = vsel %vm1009_vm5, 1.0, %v1442_v7 }
 0x210   : > { %973 = vmatmul.mubr.f32.gmra.mrb[34].mxu1 %v798_v57  ;;  %v800_v61 = vmax.f32 %v762_v35, 0.0  ;;  %v1057_v44 = vsub.f32 1.0, %v1187_v36 }
 0x211   : > { %v801_v59 = vmax.f32 %v764_v28, 0.0  ;;  %v767_v60 = vpop.f32.mrb[30].mxu1 }
 0x212   : > { %v768_v0 = vadd.f32 %v767_v60, %v2065_v2  ;;  %v769_v4 = vpop.f32.mrb[31].mxu1 }
 0x213   : > { %v770_v48 = vadd.f32 %v769_v4, %v2069_v3  ;;  %977 = vmatprep.mubr.f32.mxu1 %v801_v59 }
 0x214   : > { %978 = vmatmul.mubr.f32.gmra.mrb[36].mxu1 %v800_v61  ;;  %v802_v49 = vmax.f32 %v768_v0, 0.0 }
 0x215   : > { %v803_v8 = vmax.f32 %v770_v48, 0.0 }
 0x217   : > { %982 = vmatprep.mubr.f32.mxu1 %v803_v8  ;;  %v1188_v8 = vsel %vm1010_vm6, 1.0, %v1442_v7 }
 0x218   : > { %983 = vmatmul.mubr.f32.gmra.mrb[38].mxu1 %v802_v49  ;;  %v1058_v51 = vsub.f32 1.0, %v1188_v8 }
 0x2af   : > { %v1232_v11 = vpop.f32.mrb[32].mxu0 }
 0x2b0   : > { %v1233_v2 = vpop.f32.mrb[33].mxu0 }
 0x2b1   : > { %v1234_v3 = vadd.f32 %v1233_v2, %v1232_v11 }
 0x2b3   : > { %v910_v17 = vadd.f32 %v1234_v3, %v2108_v13  ;;  %v1235_v56 = vpop.f32.mrb[34].mxu0 }
 0x2b4   : > { %v1236_v9 = vpop.f32.mrb[35].mxu0 }
 0x2b5   : > { %v988_v31 = vmax.f32 %v910_v17, 0.0  ;;  %v1237_v34 = vadd.f32 %v1236_v9, %v1235_v56  ;;  %v1189_v56 = vsel %vm1011_vm7, 1.0, %v1442_v7 }
 0x2b6   : > { %v1059_v58 = vsub.f32 1.0, %v1189_v56 }
 0x2b7   : > { %v1068_v20 = vmul.f32 %v1052_v55, %v988_v31  ;;  %v915_v21 = vadd.f32 %v1237_v34, %v2108_v13  ;;  %v1238_v62 = vpop.f32.mrb[36].mxu0 }
 0x2b8   : > { %v1239_v29 = vpop.f32.mrb[37].mxu0 }
 0x2b9   : > { %v1084_v23 = vsub.f32 %v1068_v20, %v1182_v12  ;;  %v989_v63 = vmax.f32 %v915_v21, 0.0  ;;  %v1240_v33 = vadd.f32 %v1239_v29, %v1238_v62  ;;  %v1190_v62 = vsel %vm1012_vm8, 1.0, %v1442_v7 }
 0x2ba   : > { %v1060_v1 = vsub.f32 1.0, %v1190_v62 }
 0x2bb   : > { %1100 = vst [vmem:[%s2120_s16] sm:$0xff] %v1084_v23  ;;  %v1069_v39 = vmul.f32 %v1053_v19, %v989_v63  ;;  %v920_v5 = vadd.f32 %v1240_v33, %v2108_v13  ;;  %v1241_v40 = vpop.f32.mrb[38].mxu0 }
 0x2bc   : > { %v1242_v41 = vpop.f32.mrb[39].mxu0 }
 0x2bd   : > { %v1085_v42 = vsub.f32 %v1069_v39, %v1183_v32  ;;  %v990_v43 = vmax.f32 %v920_v5, 0.0  ;;  %v1243_v14 = vadd.f32 %v1242_v41, %v1241_v40  ;;  %v1191_v5 = vsel %vm1013_vm9, 1.0, %v1442_v7 }
 0x2be   : > { %v1061_v10 = vsub.f32 1.0, %v1191_v5 }
 0x2bf   : > { %1101 = vst [vmem:[%s2120_s16 + $0x8] sm:$0xff] %v1085_v42  ;;  %v1070_v45 = vmul.f32 %v1054_v38, %v990_v43  ;;  %v925_v15 = vadd.f32 %v1243_v14, %v2108_v13  ;;  %v1244_v46 = vpop.f32.mrb[40].mxu0 }
 0x2c0   : > { %v1245_v50 = vpop.f32.mrb[41].mxu0 }
 0x2c1   : > { %v1086_v52 = vsub.f32 %v1070_v45, %v1184_v16  ;;  %v991_v22 = vmax.f32 %v925_v15, 0.0  ;;  %v1246_v53 = vadd.f32 %v1245_v50, %v1244_v46  ;;  %v1192_v45 = vsel %vm1014_vm10, 1.0, %v1442_v7 }
 0x2c2   : > { %v1062_v18 = vsub.f32 1.0, %v1192_v45 }
 0x2c3   : > { %1102 = vst [vmem:[%s2120_s16 + $0x10] sm:$0xff] %v1086_v52  ;;  %v1071_v54 = vmul.f32 %v1055_v30, %v991_v22  ;;  %v930_v57 = vadd.f32 %v1246_v53, %v2108_v13  ;;  %v1247_v35 = vpop.f32.mrb[42].mxu0 }
 0x2c4   : > { %v1248_v28 = vpop.f32.mrb[43].mxu0 }
 0x2c5   : > { %v1087_v59 = vsub.f32 %v1071_v54, %v1185_v6  ;;  %v992_v60 = vmax.f32 %v930_v57, 0.0  ;;  %v1249_v61 = vadd.f32 %v1248_v28, %v1247_v35 }
 0x2c7   : > { %1103 = vst [vmem:[%s2120_s16 + $0x18] sm:$0xff] %v1087_v59  ;;  %v1072_v0 = vmul.f32 %v1056_v37, %v992_v60  ;;  %v935_v4 = vadd.f32 %v1249_v61, %v2108_v13  ;;  %v1250_v48 = vpop.f32.mrb[44].mxu0  ;;  %v1193_v37 = vsel %vm1015_vm11, 1.0, %v1442_v7  ;;  %v1194_v61 = vsel %vm1016_vm12, 1.0, %v1442_v7 }
 0x2c8   : > { %v1251_v49 = vpop.f32.mrb[45].mxu0  ;;  %v1063_v24 = vsub.f32 1.0, %v1193_v37  ;;  %v1064_v25 = vsub.f32 1.0, %v1194_v61 }
 0x2c9   : > { %v1088_v11 = vsub.f32 %v1072_v0, %v1186_v47  ;;  %v993_v12 = vmax.f32 %v935_v4, 0.0  ;;  %v1252_v2 = vadd.f32 %v1251_v49, %v1250_v48 }
 0x2cb   : > { %1104 = vst [vmem:[%s2120_s16 + $0x20] sm:$0xff] %v1088_v11  ;;  %v1073_v3 = vmul.f32 %v1057_v44, %v993_v12  ;;  %v940_v55 = vadd.f32 %v1252_v2, %v2108_v13  ;;  %v1253_v17 = vpop.f32.mrb[46].mxu0  ;;  %v1195_v12 = vsel %vm1017_vm13, 1.0, %v1442_v7 }
 0x2cc   : > { %v1254_v32 = vpop.f32.mrb[47].mxu0 }
 0x2cd   : > { %v1089_v9 = vsub.f32 %v1073_v3, %v1187_v36  ;;  %v994_v31 = vmax.f32 %v940_v55, 0.0  ;;  %v1255_v34 = vadd.f32 %v1254_v32, %v1253_v17  ;;  %v1065_v55 = vsub.f32 1.0, %v1195_v12 }
 0x2cf   : > { %1105 = vst [vmem:[%s2120_s16 + $0x28] sm:$0xff] %v1089_v9  ;;  %v1074_v19 = vmul.f32 %v1058_v51, %v994_v31  ;;  %v945_v20 = vadd.f32 %v1255_v34, %v2108_v13  ;;  %v1256_v21 = vpop.f32.mrb[48].mxu0  ;;  %v1196_v9 = vsel %vm1018_vm14, 1.0, %v1442_v7  ;;  %v1433_v34 = vld [vmem:[%s1641_s14 + $0x78] sm:$0xff] }
 0x2d0   : > { %v1257_v16 = vpop.f32.mrb[49].mxu0  ;;  %vm1019_vm15 = vcmp.ne.f32.partialorder %v1433_v34, 0.0  ;;  %v1066_v27 = vsub.f32 1.0, %v1196_v9 }
 0x2d1   : > { %v1090_v29 = vsub.f32 %v1074_v19, %v1188_v8  ;;  %v995_v23 = vmax.f32 %v945_v20, 0.0  ;;  %v1258_v63 = vadd.f32 %v1257_v16, %v1256_v21 }
 0x2d3   : > { %1106 = vst [vmem:[%s2120_s16 + $0x30] sm:$0xff] %v1090_v29  ;;  %v1075_v33 = vmul.f32 %v1059_v58, %v995_v23  ;;  %v950_v38 = vadd.f32 %v1258_v63, %v2108_v13  ;;  %v1259_v39 = vpop.f32.mrb[50].mxu0  ;;  %v1197_v29 = vsel %vm1019_vm15, 1.0, %v1442_v7 }
 0x2d4   : > { %v1260_v40 = vpop.f32.mrb[51].mxu0 }
 0x2d5   : > { %v1091_v6 = vsub.f32 %v1075_v33, %v1189_v56  ;;  %v996_v41 = vmax.f32 %v950_v38, 0.0  ;;  %v1261_v42 = vadd.f32 %v1260_v40, %v1259_v39  ;;  %v1067_v38 = vsub.f32 1.0, %v1197_v29 }
 0x2d7   : > { %1107 = vst [vmem:[%s2120_s16 + $0x38] sm:$0xff] %v1091_v6  ;;  %v1076_v43 = vmul.f32 %v1060_v1, %v996_v41  ;;  %v955_v14 = vadd.f32 %v1261_v42, %v2108_v13  ;;  %v1262_v30 = vpop.f32.mrb[52].mxu0 }
 0x2d8   : > { %v1263_v15 = vpop.f32.mrb[53].mxu0 }
 0x2d9   : > { %v1092_v46 = vsub.f32 %v1076_v43, %v1190_v62  ;;  %v997_v47 = vmax.f32 %v955_v14, 0.0  ;;  %v1264_v50 = vadd.f32 %v1263_v15, %v1262_v30 }
 0x2db   : > { %1108 = vst [vmem:[%s2120_s16 + $0x40] sm:$0xff] %v1092_v46  ;;  %v1077_v52 = vmul.f32 %v1061_v10, %v997_v47  ;;  %v960_v22 = vadd.f32 %v1264_v50, %v2108_v13  ;;  %v1265_v53 = vpop.f32.mrb[54].mxu0 }
 0x2dc   : > { %v1266_v54 = vpop.f32.mrb[55].mxu0 }
 0x2dd   : > { %v1093_v57 = vsub.f32 %v1077_v52, %v1191_v5  ;;  %v998_v35 = vmax.f32 %v960_v22, 0.0  ;;  %v1267_v36 = vadd.f32 %v1266_v54, %v1265_v53 }
 0x2df   : > { %1109 = vst [vmem:[%s2120_s16 + $0x48] sm:$0xff] %v1093_v57  ;;  %v1078_v28 = vmul.f32 %v1062_v18, %v998_v35  ;;  %v965_v59 = vadd.f32 %v1267_v36, %v2108_v13  ;;  %v1268_v60 = vpop.f32.mrb[32].mxu1 }
 0x2e0   : > { %v1269_v44 = vpop.f32.mrb[33].mxu1 }
 0x2e1   : > { %v1094_v0 = vsub.f32 %v1078_v28, %v1192_v45  ;;  %v999_v4 = vmax.f32 %v965_v59, 0.0  ;;  %v1270_v48 = vadd.f32 %v1269_v44, %v1268_v60 }
 0x2e3   : > { %1110 = vst [vmem:[%s2120_s16 + $0x50] sm:$0xff] %v1094_v0  ;;  %v1079_v8 = vmul.f32 %v1063_v24, %v999_v4  ;;  %v970_v49 = vadd.f32 %v1270_v48, %v2108_v13  ;;  %v1271_v11 = vpop.f32.mrb[34].mxu1 }
 0x2e4   : > { %v1272_v2 = vpop.f32.mrb[35].mxu1 }
 0x2e5   : > { %v1095_v51 = vsub.f32 %v1079_v8, %v1193_v37  ;;  %v1000_v3 = vmax.f32 %v970_v49, 0.0  ;;  %v1273_v26 = vadd.f32 %v1272_v2, %v1271_v11 }
 0x2e7   : > { %1111 = vst [vmem:[%s2120_s16 + $0x58] sm:$0xff] %v1095_v51  ;;  %v1080_v17 = vmul.f32 %v1064_v25, %v1000_v3  ;;  %v975_v56 = vadd.f32 %v1273_v26, %v2108_v13  ;;  %v1274_v32 = vpop.f32.mrb[36].mxu1 }
 0x2e8   : > { %v1275_v31 = vpop.f32.mrb[37].mxu1 }
 0x2e9   : > { %v1096_v58 = vsub.f32 %v1080_v17, %v1194_v61  ;;  %v1001_v19 = vmax.f32 %v975_v56, 0.0  ;;  %v1276_v20 = vadd.f32 %v1275_v31, %v1274_v32 }
 0x2eb   : > { %1112 = vst [vmem:[%s2120_s16 + $0x60] sm:$0xff] %v1096_v58  ;;  %v1081_v21 = vmul.f32 %v1065_v55, %v1001_v19  ;;  %v980_v62 = vadd.f32 %v1276_v20, %v2108_v13  ;;  %v1277_v16 = vpop.f32.mrb[38].mxu1 }
 0x2ec   : > { %v1278_v23 = vpop.f32.mrb[39].mxu1 }
 0x2ed   : > { %v1097_v63 = vsub.f32 %v1081_v21, %v1195_v12  ;;  %v1002_v1 = vmax.f32 %v980_v62, 0.0  ;;  %v1279_v33 = vadd.f32 %v1278_v23, %v1277_v16 }
 0x2ef   : > { %1113 = vst [vmem:[%s2120_s16 + $0x68] sm:$0xff] %v1097_v63  ;;  %v1082_v39 = vmul.f32 %v1066_v27, %v1002_v1  ;;  %v985_v5 = vadd.f32 %v1279_v33, %v2108_v13 }
 0x2f1   : > { %v1098_v40 = vsub.f32 %v1082_v39, %v1196_v9  ;;  %v1003_v6 = vmax.f32 %v985_v5, 0.0 }
 0x2f3   : > { %1114 = vst [vmem:[%s2120_s16 + $0x70] sm:$0xff] %v1098_v40  ;;  %v1083_v41 = vmul.f32 %v1067_v38, %v1003_v6 }
 0x2f5   : > { %v1099_v42 = vsub.f32 %v1083_v41, %v1197_v29 }
 0x2f7   : > { %1115 = vst [vmem:[%s2120_s16 + $0x78] sm:$0xff] %v1099_v42 }
 0x2f8 PF: > { %s17_s24 = sadd.s32 1, %s1440_s24  }
 0x2f9   : > { %p14_p4 = scmp.ge.s32.totalorder %s17_s24, 4  }
 0x2fb   :  { %16 = sbr.rel (!%p14_p4) target bundleno = 1 (0x1), region = 78 }

</bundles_post_ra>
